<compile_context>
chip_gen: v7x
topology: tpu7x:2x2x1
jax: 0.10.0
libtpu: 0.0.40
codegen_flags: <defaults>
</compile_context>

<pallas_src>
from functools import partial

import jax
import jax.numpy as jnp
from jax.experimental import pallas as pl
from jax.experimental.pallas import tpu as pltpu

LANE = 128      # vreg lane width
SUBLANE = 8     # f32 sublane count


def _round_up(x, m):
    return ((x + m - 1) // m) * m


# ----------------------------- Fused Pallas kernel -------------------------- #

def _ae_fused_kernel(x_ref, w_ref, b_ref, o_ref, *, acts):
    """Whole (folded) FC autoencoder forward on one (TB, S) batch tile.

    x_ref : (TB, S)    input tile, MXU dtype (bf16 or f32)
    w_ref : (L, S, S)  packed weights, MXU dtype (constant index_map, resident)
    b_ref : (L, 1, S)  packed biases, f32
    o_ref : (TB, S)    f32 reconstruction tile
    acts  : static tuple[bool] -- apply tanh after layer l
    """
    mxu_dtype = x_ref.dtype
    n_layers = len(acts)
    h = x_ref[...]
    y = None
    for l in range(n_layers):
        # MXU matmul (bf16 or f32 operands), f32 accumulation.
        y = jnp.dot(h, w_ref[l], preferred_element_type=jnp.float32)
        y = y + b_ref[l]                  # (1, S) f32 bias broadcast (VPU)
        if acts[l]:
            y = jnp.tanh(y)               # EUP slot, f32
        if l + 1 < n_layers:
            h = y.astype(mxu_dtype)
    o_ref[...] = y.astype(o_ref.dtype)


def _fused_forward(x_pad, w_all, b_all, *, tb, acts):
    bp, s = x_pad.shape
    n_layers = w_all.shape[0]
    nb = bp // tb
    return pl.pallas_call(
        partial(_ae_fused_kernel, acts=acts),
        out_shape=jax.ShapeDtypeStruct((bp, s), jnp.float32),
        grid=(nb,),
        in_specs=[
            pl.BlockSpec((tb, s), lambda i: (i, 0)),
            # Packed weights / biases: constant index_map -> fetched once,
            # resident in VMEM across all grid steps (one descriptor each).
            pl.BlockSpec((n_layers, s, s), lambda i: (0, 0, 0)),
            pl.BlockSpec((n_layers, 1, s), lambda i: (0, 0, 0)),
        ],
        out_specs=pl.BlockSpec((tb, s), lambda i: (i, 0)),
        compiler_params=pltpu.CompilerParams(
            dimension_semantics=("parallel",)),   # v7x: shard batch over 2 TCs
    )(x_pad, w_all, b_all)


# --------------------------- Parameter creation ------------------------------ #

def _init_linear(key, fan_in, fan_out):
    """Deterministic PyTorch-nn.Linear-style init: U(-1/sqrt(fan_in), +)."""
    kw, kb = jax.random.split(key)
    bound = 1.0 / jnp.sqrt(jnp.float32(fan_in))
    w = jax.random.uniform(kw, (fan_in, fan_out), jnp.float32, -bound, bound)
    b = jax.random.uniform(kb, (1, fan_out), jnp.float32, -bound, bound)
    return w, b


def make_autoencoder_params(key, in_dim, h1, h2, latent):
    keys = jax.random.split(key, 6)
    return {
        # FCEncoder: D -> h1 -> h2 -> latent
        "enc1": _init_linear(keys[0], in_dim, h1),
        "enc2": _init_linear(keys[1], h1, h2),
        "enc3": _init_linear(keys[2], h2, latent),
        # FCDecoder: latent -> h2 -> h1 -> D
        "dec1": _init_linear(keys[3], latent, h2),
        "dec2": _init_linear(keys[4], h2, h1),
        "dec3": _init_linear(keys[5], h1, in_dim),
    }


def prepare_kernel_params(params, use_bf16=True):
    """Fold enc3+dec1, pad every layer to one lane-dense (S, S) slab, pack.

    Padded weight rows/cols and bias entries are exactly zero, so padded hidden
    features stay zero through every tanh and the real output columns are
    identical to the unpadded network.
    """
    hi = jax.lax.Precision.HIGHEST
    w3, b3 = params["enc3"]
    w4, b4 = params["dec1"]
    # enc3 (linear) composed with dec1: exact (no nonlinearity in between).
    w34 = jnp.dot(w3, w4, precision=hi)
    b34 = jnp.dot(b3, w4, precision=hi) + b4

    layers = [
        (*params["enc1"], True),    # D  -> h1, tanh
        (*params["enc2"], True),    # h1 -> h2, tanh
        (w34, b34, True),           # h2 -> h2 (enc3 + dec1 folded), tanh
        (*params["dec2"], True),    # h2 -> h1, tanh
        (*params["dec3"], False),   # h1 -> D, linear
    ]
    n_layers = len(layers)
    s = max(_round_up(d, LANE) for (w, _, _) in layers for d in w.shape)

    w_all = jnp.zeros((n_layers, s, s), jnp.float32)
    b_all = jnp.zeros((n_layers, 1, s), jnp.float32)
    acts = []
    for l, (w, b, act) in enumerate(layers):
        k, n = w.shape
        w_all = w_all.at[l, :k, :n].set(w)
        b_all = b_all.at[l, :, :n].set(b.reshape(1, n))
        acts.append(act)

    mxu_dtype = jnp.bfloat16 if use_bf16 else jnp.float32
    return {
        "w": w_all.astype(mxu_dtype),   # pre-cast once: halves weight HBM/VMEM
        "b": b_all,                     # biases stay f32 (f32 epilogue)
        "acts": tuple(acts),
        "in_dim": int(params["enc1"][0].shape[0]),
        "out_dim": int(params["dec3"][0].shape[1]),
    }


# ------------------------------ Forward pass --------------------------------- #

@partial(jax.jit, static_argnames=("acts", "in_dim", "out_dim", "block_b"))
def _forward_jit(w_all, b_all, x, *, acts, in_dim, out_dim, block_b):
    B, C, D = x.shape
    d_model = C * D
    # A mismatched feature dim would otherwise silently land in the wrong
    # padded columns and produce garbage instead of an error.
    if d_model != in_dim:
        raise ValueError(f"x has {d_model} features but params expect {in_dim}")
    if out_dim != in_dim:
        raise ValueError("decoder output width must mirror encoder input width")
    s = w_all.shape[1]
    assert s % LANE == 0 and s >= d_model

    # Batch tile: large (amortizes the ~0.35us/grid-step overhead and feeds
    # both v7x TensorCores once b_pad/tb >= 2), a multiple of 8, never bigger
    # than the padded batch. Sweep block_b in 512..2048 for peak HBM
    # utilization; on v5e keep the footprint under the 16 MiB scoped default.
    b_pad_min = _round_up(B, SUBLANE)
    tb = max(SUBLANE, min(_round_up(block_b, SUBLANE), b_pad_min))
    b_pad = _round_up(B, tb)

    mxu_dtype = w_all.dtype
    x2 = x.reshape(B, d_model)
    x_pad = jnp.zeros((b_pad, s), mxu_dtype).at[:B, :d_model].set(
        x2.astype(mxu_dtype))

    out_pad = _fused_forward(x_pad, w_all, b_all, tb=tb, acts=acts)
    return out_pad[:B, :d_model].reshape(B, 1, d_model)


def autoencoder_forward(kparams, x, block_b=1024):
    """x: (B, 1, D) float32 -> recon: (B, 1, D) float32."""
    return _forward_jit(kparams["w"], kparams["b"], x,
                        acts=kparams["acts"],
                        in_dim=kparams["in_dim"],
                        out_dim=kparams["out_dim"],
                        block_b=block_b)


# ------------------------- Pure-JAX reference (check) ------------------------ #

def reference_forward(params, x):
    B, C, D = x.shape
    h = x.reshape(B, C * D)

    def lin(h, wb, act):
        w, b = wb
        y = h @ w + b
        return jnp.tanh(y) if act else y

    h = lin(h, params["enc1"], True)
    h = lin(h, params["enc2"], True)
    z = lin(h, params["enc3"], False)
    h = lin(z, params["dec1"], True)
    h = lin(h, params["dec2"], True)
    y = lin(h, params["dec3"], False)
    return y.reshape(B, 1, C * D)


# --------------------------------- Driver ------------------------------------ #

if __name__ == "__main__":
    key = jax.random.PRNGKey(0)
    k_param, k_data = jax.random.split(key)

    B, D = 2, 64          # train_autoencoder: features.view(-1, 1, D)
    H1, H2, LATENT = 32, 16, 8

    params = make_autoencoder_params(k_param, D, H1, H2, LATENT)
    x = jax.random.normal(k_data, (B, 1, D), dtype=jnp.float32)
    ref = reference_forward(params, x)

    # Default path: bf16 MXU operands (f32 accumulate / bias / tanh).
    kp_bf16 = prepare_kernel_params(params, use_bf16=True)
    recon = autoencoder_forward(kp_bf16, x)
    jax.block_until_ready(recon)
    assert recon.shape == (B, 1, D)
    assert recon.dtype == jnp.float32
    assert jnp.all(jnp.isfinite(recon))
    err_bf16 = float(jnp.max(jnp.abs(recon - ref)))
    assert jnp.allclose(recon, ref, atol=5e-2, rtol=5e-2), err_bf16

    # Pure-f32 path (numerical parity with the PyTorch module).
    kp_f32 = prepare_kernel_params(params, use_bf16=False)
    recon32 = autoencoder_forward(kp_f32, x)
    jax.block_until_ready(recon32)
    assert recon32.shape == (B, 1, D)
    err_f32 = float(jnp.max(jnp.abs(recon32 - ref)))
    assert jnp.allclose(recon32, ref, atol=2e-3, rtol=2e-3), err_f32

    print("KERNEL_OK")
</pallas_src>

<mosaic_0001>
module attributes {stable_mosaic.version = 11 : i64} {
  func.func @_ae_fused_kernel(%arg0: i32, %arg1: memref<8x128xbf16, #tpu.memory_space<vmem>>, %arg2: memref<5x128x128xbf16, #tpu.memory_space<vmem>>, %arg3: memref<5x1x128xf32, #tpu.memory_space<vmem>>, %arg4: memref<8x128xf32, #tpu.memory_space<vmem>>) attributes {dimension_semantics = [#tpu.dimension_semantics<parallel>], iteration_bounds = array<i64: 1>, scalar_prefetch = 0 : i64, scratch_operands = 0 : i64, tpu.core_type = #tpu.core_type<tc>, window_params = [{transform_indices = @transform_0, window_bounds = array<i64: 8, 128>}, {pipeline_mode = #tpu.pipeline_mode<synchronous>, transform_indices = @transform_1, window_bounds = array<i64: 5, 128, 128>}, {pipeline_mode = #tpu.pipeline_mode<synchronous>, transform_indices = @transform_2, window_bounds = array<i64: 5, 1, 128>}, {transform_indices = @transform_3, window_bounds = array<i64: 8, 128>}]} {
    %c0 = arith.constant 0 : index
    %c0_0 = arith.constant 0 : index
    %0 = vector.load %arg1[%c0, %c0_0] : memref<8x128xbf16, #tpu.memory_space<vmem>>, vector<8x128xbf16>
    %c0_1 = arith.constant 0 : index
    %c0_2 = arith.constant 0 : index
    %c0_3 = arith.constant 0 : index
    %1 = vector.load %arg2[%c0_1, %c0_2, %c0_3] : memref<5x128x128xbf16, #tpu.memory_space<vmem>>, vector<1x128x128xbf16>
    %2 = vector.shape_cast %1 : vector<1x128x128xbf16> to vector<128x128xbf16>
    %cst = arith.constant dense<0.000000e+00> : vector<8x128xf32>
    %3 = tpu.matmul %0, %2, %cst {dimension_numbers = #tpu.dot_dimension_numbers<[1], [0], [0], [1], [0, 0, 1, 1], [], []>} : vector<8x128xbf16>, vector<128x128xbf16>, vector<8x128xf32> -> vector<8x128xf32>
    %c0_4 = arith.constant 0 : index
    %c0_5 = arith.constant 0 : index
    %c0_6 = arith.constant 0 : index
    %4 = vector.load %arg3[%c0_4, %c0_5, %c0_6] : memref<5x1x128xf32, #tpu.memory_space<vmem>>, vector<1x1x128xf32>
    %5 = vector.shape_cast %4 : vector<1x1x128xf32> to vector<1x128xf32>
    %6 = vector.broadcast %5 : vector<1x128xf32> to vector<8x128xf32>
    %7 = arith.addf %3, %6 : vector<8x128xf32>
    %8 = math.tanh %7 : vector<8x128xf32>
    %9 = arith.truncf %8 : vector<8x128xf32> to vector<8x128xbf16>
    %c1 = arith.constant 1 : index
    %c0_7 = arith.constant 0 : index
    %c0_8 = arith.constant 0 : index
    %10 = vector.load %arg2[%c1, %c0_7, %c0_8] : memref<5x128x128xbf16, #tpu.memory_space<vmem>>, vector<1x128x128xbf16>
    %11 = vector.shape_cast %10 : vector<1x128x128xbf16> to vector<128x128xbf16>
    %cst_9 = arith.constant dense<0.000000e+00> : vector<8x128xf32>
    %12 = tpu.matmul %9, %11, %cst_9 {dimension_numbers = #tpu.dot_dimension_numbers<[1], [0], [0], [1], [0, 0, 1, 1], [], []>} : vector<8x128xbf16>, vector<128x128xbf16>, vector<8x128xf32> -> vector<8x128xf32>
    %c1_10 = arith.constant 1 : index
    %c0_11 = arith.constant 0 : index
    %c0_12 = arith.constant 0 : index
    %13 = vector.load %arg3[%c1_10, %c0_11, %c0_12] : memref<5x1x128xf32, #tpu.memory_space<vmem>>, vector<1x1x128xf32>
    %14 = vector.shape_cast %13 : vector<1x1x128xf32> to vector<1x128xf32>
    %15 = vector.broadcast %14 : vector<1x128xf32> to vector<8x128xf32>
    %16 = arith.addf %12, %15 : vector<8x128xf32>
    %17 = math.tanh %16 : vector<8x128xf32>
    %18 = arith.truncf %17 : vector<8x128xf32> to vector<8x128xbf16>
    %c2 = arith.constant 2 : index
    %c0_13 = arith.constant 0 : index
    %c0_14 = arith.constant 0 : index
    %19 = vector.load %arg2[%c2, %c0_13, %c0_14] : memref<5x128x128xbf16, #tpu.memory_space<vmem>>, vector<1x128x128xbf16>
    %20 = vector.shape_cast %19 : vector<1x128x128xbf16> to vector<128x128xbf16>
    %cst_15 = arith.constant dense<0.000000e+00> : vector<8x128xf32>
    %21 = tpu.matmul %18, %20, %cst_15 {dimension_numbers = #tpu.dot_dimension_numbers<[1], [0], [0], [1], [0, 0, 1, 1], [], []>} : vector<8x128xbf16>, vector<128x128xbf16>, vector<8x128xf32> -> vector<8x128xf32>
    %c2_16 = arith.constant 2 : index
    %c0_17 = arith.constant 0 : index
    %c0_18 = arith.constant 0 : index
    %22 = vector.load %arg3[%c2_16, %c0_17, %c0_18] : memref<5x1x128xf32, #tpu.memory_space<vmem>>, vector<1x1x128xf32>
    %23 = vector.shape_cast %22 : vector<1x1x128xf32> to vector<1x128xf32>
    %24 = vector.broadcast %23 : vector<1x128xf32> to vector<8x128xf32>
    %25 = arith.addf %21, %24 : vector<8x128xf32>
    %26 = math.tanh %25 : vector<8x128xf32>
    %27 = arith.truncf %26 : vector<8x128xf32> to vector<8x128xbf16>
    %c3 = arith.constant 3 : index
    %c0_19 = arith.constant 0 : index
    %c0_20 = arith.constant 0 : index
    %28 = vector.load %arg2[%c3, %c0_19, %c0_20] : memref<5x128x128xbf16, #tpu.memory_space<vmem>>, vector<1x128x128xbf16>
    %29 = vector.shape_cast %28 : vector<1x128x128xbf16> to vector<128x128xbf16>
    %cst_21 = arith.constant dense<0.000000e+00> : vector<8x128xf32>
    %30 = tpu.matmul %27, %29, %cst_21 {dimension_numbers = #tpu.dot_dimension_numbers<[1], [0], [0], [1], [0, 0, 1, 1], [], []>} : vector<8x128xbf16>, vector<128x128xbf16>, vector<8x128xf32> -> vector<8x128xf32>
    %c3_22 = arith.constant 3 : index
    %c0_23 = arith.constant 0 : index
    %c0_24 = arith.constant 0 : index
    %31 = vector.load %arg3[%c3_22, %c0_23, %c0_24] : memref<5x1x128xf32, #tpu.memory_space<vmem>>, vector<1x1x128xf32>
    %32 = vector.shape_cast %31 : vector<1x1x128xf32> to vector<1x128xf32>
    %33 = vector.broadcast %32 : vector<1x128xf32> to vector<8x128xf32>
    %34 = arith.addf %30, %33 : vector<8x128xf32>
    %35 = math.tanh %34 : vector<8x128xf32>
    %36 = arith.truncf %35 : vector<8x128xf32> to vector<8x128xbf16>
    %c4 = arith.constant 4 : index
    %c0_25 = arith.constant 0 : index
    %c0_26 = arith.constant 0 : index
    %37 = vector.load %arg2[%c4, %c0_25, %c0_26] : memref<5x128x128xbf16, #tpu.memory_space<vmem>>, vector<1x128x128xbf16>
    %38 = vector.shape_cast %37 : vector<1x128x128xbf16> to vector<128x128xbf16>
    %cst_27 = arith.constant dense<0.000000e+00> : vector<8x128xf32>
    %39 = tpu.matmul %36, %38, %cst_27 {dimension_numbers = #tpu.dot_dimension_numbers<[1], [0], [0], [1], [0, 0, 1, 1], [], []>} : vector<8x128xbf16>, vector<128x128xbf16>, vector<8x128xf32> -> vector<8x128xf32>
    %c4_28 = arith.constant 4 : index
    %c0_29 = arith.constant 0 : index
    %c0_30 = arith.constant 0 : index
    %40 = vector.load %arg3[%c4_28, %c0_29, %c0_30] : memref<5x1x128xf32, #tpu.memory_space<vmem>>, vector<1x1x128xf32>
    %41 = vector.shape_cast %40 : vector<1x1x128xf32> to vector<1x128xf32>
    %42 = vector.broadcast %41 : vector<1x128xf32> to vector<8x128xf32>
    %43 = arith.addf %39, %42 : vector<8x128xf32>
    %c0_31 = arith.constant 0 : index
    %c0_32 = arith.constant 0 : index
    %44 = vector.load %arg4[%c0_31, %c0_32] : memref<8x128xf32, #tpu.memory_space<vmem>>, vector<8x128xf32>
    tpu.vector_store %arg4[%c0_31, %c0_32], %43 {strides = array<i32>} : memref<8x128xf32, #tpu.memory_space<vmem>>, vector<8x128xf32>,
    return
  }
  func.func @transform_0(%arg0: i32) -> (i32, i32) {
    %c0_i32 = arith.constant 0 : i32
    %c0_i32_0 = arith.constant 0 : i32
    return %arg0, %c0_i32 : i32, i32
  }
  func.func @transform_1(%arg0: i32) -> (i32, i32, i32) {
    %c0_i32 = arith.constant 0 : i32
    %c0_i32_0 = arith.constant 0 : i32
    %c0_i32_1 = arith.constant 0 : i32
    %c0_i32_2 = arith.constant 0 : i32
    return %c0_i32, %c0_i32_0, %c0_i32_1 : i32, i32, i32
  }
  func.func @transform_2(%arg0: i32) -> (i32, i32, i32) {
    %c0_i32 = arith.constant 0 : i32
    %c0_i32_0 = arith.constant 0 : i32
    %c0_i32_1 = arith.constant 0 : i32
    %c0_i32_2 = arith.constant 0 : i32
    return %c0_i32, %c0_i32_0, %c0_i32_1 : i32, i32, i32
  }
  func.func @transform_3(%arg0: i32) -> (i32, i32) {
    %c0_i32 = arith.constant 0 : i32
    %c0_i32_0 = arith.constant 0 : i32
    return %arg0, %c0_i32 : i32, i32
  }
}

</mosaic_0001>

<bundles_post_ra>
// kernel: _forward_jit.1
= control target key start
LH: loop header
LB: loop body
LE: loop exit
PB: predicated region body
PF: predicated region fallthrough
CT: control target
= control target key end

     0   :  { %8 = vsyncpa [#allocation3], 0  ;;  %s878_s12 = smov [#allocation2]   ;;  %s986_s0 = inlined_call_operand.vmem [shape: bf16[8,128], index: 0, kind: input, shape index: {}]   ;;  %s987_s1 = inlined_call_operand.hbm [shape: bf16[5,128,128], index: 1, kind: input, shape index: {}]   ;;  %s988_s2 = inlined_call_operand.vmem [shape: f32[5,1,128], index: 2, kind: input, shape index: {}]   ;;  %s989_s3 = inlined_call_operand.vmem [shape: f32[8,128], index: 3, kind: output, shape index: {}]  }
   0x1   :  { %s16_s13 = sshll.u32 %s878_s12, 4  ;;  %s854_s16 = scalar_lea.hbm %s987_s1, 5120  ;;  %s17_s13 = int_to_ptr.vmem [resolvable:$true] %s16_s13 }
   0x2   :  { %p855_p0 = scmp.ne.s32.totalorder %s987_s1, %s854_s16  ;;  %p858_p1 = scmp.lt.u32.totalorder %s854_s16, %s987_s1 }
   0x4   :  { %p860_p2 = pnand %p858_p1, %p855_p0 }
   0x6   :  { %863 = shalt.err (!%p860_p2)
}
   0x7   :  { %s864_s21 = scalar_lea.vmem %s17_s13, 5120  ;;  %p869_p4 = scmp.lt.s32.totalorder %s17_s13, %s17_s13 }
   0x8   :  { %p865_p3 = scmp.ne.s32.totalorder %s17_s13, %s864_s21  ;;  %p870_p5 = scmp.lt.s32.totalorder %s864_s21, %s864_s21 }
   0xa   :  { %p871_p6 = por %p870_p5, %p869_p4 }
   0xc   :  { %p872_p7 = pnand %p871_p6, %p865_p3 }
   0xe   :  { %875 = shalt.err (!%p872_p7)
}
   0xf   :  { %s879_s22 = smov 64   ;;  %s880_s23 = smov 4  }
  0x10   :  { %22 = dma.hbm_to_vmem [thread:$0]  %s987_s1, 5120, %s17_s13, [#allocation3], %s879_s22, %s879_s22, %s880_s23  }
  0x11   :  { %876 = dma.done.wait [#allocation3], 5120  }
  0x12   :  { %877 = vsyncadd [#allocation3], 4294962176  ;;  %v881_v0 = vmov 0.0   ;;  %vm882_vm0 = vmmov 0   ;;  %v806_v1 = vld [vmem:[#allocation2] sm:$0xff]   ;;  %v807_v2 = vld [vmem:[#allocation2 + $0x8] sm:$0xff]  }
  0x13   :  { %701 = vmatprep.subr.bf16.mxu0 %v881_v0  ;;  %717 = vmatprep.mubr.msk.bf16.mxu0 %vm882_vm0, %v881_v0  ;;  %v808_v3 = vld [vmem:[#allocation2 + $0x10] sm:$0xff]   ;;  %v814_v4 = vld [vmem:[#allocation2 + $0x40] sm:$0xff]   ;;  %v809_v5 = vld [vmem:[#allocation2 + $0x18] sm:$0xff]  }
  0x14   :  { %721 = vmatprep.subr.bf16.mxu1 %v881_v0  ;;  %737 = vmatprep.mubr.msk.bf16.mxu1 %vm882_vm0, %v881_v0  ;;  %v815_v6 = vld [vmem:[#allocation2 + $0x48] sm:$0xff]   ;;  %v810_v7 = vld [vmem:[#allocation2 + $0x20] sm:$0xff]   ;;  %v816_v8 = vld [vmem:[#allocation2 + $0x50] sm:$0xff]  }
  0x15   :  { %702 = vmatpush3.bf16.msra.mxu0 %v806_v1  ;;  %722 = vmatpush3.bf16.msra.mxu1 %v814_v4  ;;  %v811_v9 = vld [vmem:[#allocation2 + $0x28] sm:$0xff]   ;;  %v817_v10 = vld [vmem:[#allocation2 + $0x58] sm:$0xff]   ;;  %v812_v11 = vld [vmem:[#allocation2 + $0x30] sm:$0xff]  }
  0x16   :  { %703 = vmatprep.subr.bf16.mxu0 %v881_v0  ;;  %723 = vmatprep.subr.bf16.mxu1 %v881_v0  ;;  %v813_v12 = vld [vmem:[#allocation2 + $0x38] sm:$0xff]   ;;  %v29_v13 = vld [vmem:[%s986_s0] sm:$0xf]  ;;  %v819_v15 = vld [vmem:[#allocation2 + $0x68] sm:$0xff]  }
  0x17   :  { %v818_v14 = vld [vmem:[#allocation2 + $0x60] sm:$0xff]   ;;  %v820_v16 = vld [vmem:[#allocation2 + $0x70] sm:$0xff]   ;;  %v821_v17 = vld [vmem:[#allocation2 + $0x78] sm:$0xff]  }
  0x18   :  { %v822_v18 = vld [vmem:[#allocation2 + $0x80] sm:$0xff]   ;;  %v823_v19 = vld [vmem:[#allocation2 + $0x88] sm:$0xff]   ;;  %v824_v20 = vld [vmem:[#allocation2 + $0x90] sm:$0xff]  }
  0x19   :  { %704 = vmatpush3.bf16.msra.mxu0 %v807_v2  ;;  %724 = vmatpush3.bf16.msra.mxu1 %v815_v6  ;;  %v825_v21 = vld [vmem:[#allocation2 + $0x98] sm:$0xff]   ;;  %v607_v22 = vld [vmem:[%s988_s2] ss:$0 sm:$0xff]  ;;  %v827_v31 = vld [vmem:[#allocation2 + $0xa8] sm:$0xff]  }
  0x1a   :  { %705 = vmatprep.subr.bf16.mxu0 %v881_v0  ;;  %725 = vmatprep.subr.bf16.mxu1 %v881_v0  ;;  %v826_v30 = vld [vmem:[#allocation2 + $0xa0] sm:$0xff]   ;;  %v828_v32 = vld [vmem:[#allocation2 + $0xb0] sm:$0xff]   ;;  %v829_v33 = vld [vmem:[#allocation2 + $0xb8] sm:$0xff]  }
  0x1b   :  { %v830_v34 = vld [vmem:[#allocation2 + $0xc0] sm:$0xff]   ;;  %v831_v35 = vld [vmem:[#allocation2 + $0xc8] sm:$0xff]   ;;  %v832_v36 = vld [vmem:[#allocation2 + $0xd0] sm:$0xff]  }
  0x1c   :  { %v833_v37 = vld [vmem:[#allocation2 + $0xd8] sm:$0xff]   ;;  %v617_v38 = vld [vmem:[%s988_s2 + $0x1] ss:$0 sm:$0xff]  ;;  %v835_v47 = vld [vmem:[#allocation2 + $0xe8] sm:$0xff]  }
  0x1d   :  { %706 = vmatpush3.bf16.msra.mxu0 %v808_v3  ;;  %726 = vmatpush3.bf16.msra.mxu1 %v816_v8  ;;  %v834_v46 = vld [vmem:[#allocation2 + $0xe0] sm:$0xff]   ;;  %v836_v48 = vld [vmem:[#allocation2 + $0xf0] sm:$0xff]   ;;  %v837_v49 = vld [vmem:[#allocation2 + $0xf8] sm:$0xff]  }
  0x1e   :  { %707 = vmatprep.subr.bf16.mxu0 %v881_v0  ;;  %727 = vmatprep.subr.bf16.mxu1 %v881_v0  ;;  %v838_v50 = vld [vmem:[#allocation2 + $0x100] sm:$0xff]   ;;  %v839_v51 = vld [vmem:[#allocation2 + $0x108] sm:$0xff]   ;;  %v840_v52 = vld [vmem:[#allocation2 + $0x110] sm:$0xff]  }
  0x1f   :  { %v841_v53 = vld [vmem:[#allocation2 + $0x118] sm:$0xff]   ;;  %v627_v54 = vld [vmem:[%s988_s2 + $0x2] ss:$0 sm:$0xff]  ;;  %v843_v63 = vld [vmem:[#allocation2 + $0x128] sm:$0xff]  }
  0x20   :  { %v842_v62 = vld [vmem:[#allocation2 + $0x120] sm:$0xff]   ;;  %v844_v1 = vld [vmem:[#allocation2 + $0x130] sm:$0xff]   ;;  %v845_v2 = vld [vmem:[#allocation2 + $0x138] sm:$0xff]  }
  0x21   :  { %708 = vmatpush3.bf16.msra.mxu0 %v809_v5  ;;  %728 = vmatpush3.bf16.msra.mxu1 %v817_v10  ;;  %v637_v3 = vld [vmem:[%s988_s2 + $0x3] ss:$0 sm:$0xff] }
  0x22   :  { %709 = vmatprep.subr.bf16.mxu0 %v881_v0  ;;  %729 = vmatprep.subr.bf16.mxu1 %v881_v0 }
  0x25   :  { %710 = vmatpush3.bf16.msra.mxu0 %v810_v7  ;;  %730 = vmatpush3.bf16.msra.mxu1 %v818_v14 }
  0x26   :  { %711 = vmatprep.subr.bf16.mxu0 %v881_v0  ;;  %731 = vmatprep.subr.bf16.mxu1 %v881_v0 }
  0x29   :  { %712 = vmatpush3.bf16.msra.mxu0 %v811_v9  ;;  %732 = vmatpush3.bf16.msra.mxu1 %v819_v15 }
  0x2a   :  { %713 = vmatprep.subr.bf16.mxu0 %v881_v0  ;;  %733 = vmatprep.subr.bf16.mxu1 %v881_v0 }
  0x2d   :  { %714 = vmatpush3.bf16.msra.mxu0 %v812_v11  ;;  %734 = vmatpush3.bf16.msra.mxu1 %v820_v16  ;;  %v647_v11 = vld [vmem:[%s988_s2 + $0x4] ss:$0 sm:$0xff] }
  0x2e   :  { %715 = vmatprep.subr.bf16.mxu0 %v881_v0  ;;  %735 = vmatprep.subr.bf16.mxu1 %v881_v0 }
  0x31   :  { %716 = vmatpush3.bf16.msra.mxu0 %v813_v12  ;;  %736 = vmatpush3.bf16.msra.mxu1 %v821_v17 }
  0x32   :  { %741 = vmatprep.subr.bf16.mxu0 %v881_v0  ;;  %761 = vmatprep.subr.bf16.mxu1 %v881_v0 }
  0x34   :  { %718 = vmatmul.mubr.bf16.vlgmr.msra.gmra.mrb[0].mxu0 %v29_v13 }
  0x35   :  { %757 = vmatprep.mubr.msk.bf16.mxu0 %vm882_vm0, %v881_v0  ;;  %742 = vmatpush3.bf16.msra.mxu0 %v822_v18 }
  0x36   :  { %743 = vmatprep.subr.bf16.mxu0 %v881_v0 }
  0x39   :  { %744 = vmatpush3.bf16.msra.mxu0 %v823_v19 }
  0x3a   :  { %745 = vmatprep.subr.bf16.mxu0 %v881_v0 }
  0x3d   :  { %746 = vmatpush3.bf16.msra.mxu0 %v824_v20 }
  0x3e   :  { %747 = vmatprep.subr.bf16.mxu0 %v881_v0 }
  0x41   :  { %748 = vmatpush3.bf16.msra.mxu0 %v825_v21 }
  0x42   :  { %749 = vmatprep.subr.bf16.mxu0 %v881_v0 }
  0x45   :  { %750 = vmatpush3.bf16.msra.mxu0 %v826_v30 }
  0x46   :  { %751 = vmatprep.subr.bf16.mxu0 %v881_v0 }
  0x49   :  { %752 = vmatpush3.bf16.msra.mxu0 %v827_v31 }
  0x4a   :  { %753 = vmatprep.subr.bf16.mxu0 %v881_v0 }
  0x4d   :  { %754 = vmatpush3.bf16.msra.mxu0 %v828_v32 }
  0x4e   :  { %755 = vmatprep.subr.bf16.mxu0 %v881_v0 }
  0x51   :  { %756 = vmatpush3.bf16.msra.mxu0 %v829_v33 }
  0x52   :  { %781 = vmatprep.subr.bf16.mxu0 %v881_v0 }
 0x107   :  { %v135_v23 = vpop.f32.mrb[0].mxu0 }
 0x108   :  { %v136_v24 = vadd.f32 %v607_v22, %v135_v23  ;;  %v719_v25 = vpop.f32.mrb[1].mxu0 }
 0x109   :  { %v138_v26 = vpop.f32.mrb[2].mxu0 }
 0x10a   :  { %846 = vtanh.f32 %v136_v24  ;;  %v720_v27 = vpop.f32.mrb[3].mxu0 }
 0x114   :  { %v847_v28 = vpop.eup %846 }
 0x115   :  { %v142_v29 = vpack.c.bf16 %v847_v28, %v847_v28 }
 0x117   :  { %738 = vmatmul.mubr.bf16.vlgmr.msra.gmra.mrb[0].mxu1 %v142_v29 }
 0x118   :  { %777 = vmatprep.mubr.msk.bf16.mxu1 %vm882_vm0, %v881_v0  ;;  %762 = vmatpush3.bf16.msra.mxu1 %v830_v34 }
 0x119   :  { %763 = vmatprep.subr.bf16.mxu1 %v881_v0 }
 0x11c   :  { %764 = vmatpush3.bf16.msra.mxu1 %v831_v35 }
 0x11d   :  { %765 = vmatprep.subr.bf16.mxu1 %v881_v0 }
 0x120   :  { %766 = vmatpush3.bf16.msra.mxu1 %v832_v36 }
 0x121   :  { %767 = vmatprep.subr.bf16.mxu1 %v881_v0 }
 0x124   :  { %768 = vmatpush3.bf16.msra.mxu1 %v833_v37 }
 0x125   :  { %769 = vmatprep.subr.bf16.mxu1 %v881_v0 }
 0x128   :  { %770 = vmatpush3.bf16.msra.mxu1 %v834_v46 }
 0x129   :  { %771 = vmatprep.subr.bf16.mxu1 %v881_v0 }
 0x12c   :  { %772 = vmatpush3.bf16.msra.mxu1 %v835_v47 }
 0x12d   :  { %773 = vmatprep.subr.bf16.mxu1 %v881_v0 }
 0x130   :  { %774 = vmatpush3.bf16.msra.mxu1 %v836_v48 }
 0x131   :  { %775 = vmatprep.subr.bf16.mxu1 %v881_v0 }
 0x134   :  { %776 = vmatpush3.bf16.msra.mxu1 %v837_v49 }
 0x1ea   :  { %v250_v39 = vpop.f32.mrb[0].mxu1 }
 0x1eb   :  { %v251_v40 = vadd.f32 %v617_v38, %v250_v39  ;;  %v739_v41 = vpop.f32.mrb[1].mxu1 }
 0x1ec   :  { %v253_v42 = vpop.f32.mrb[2].mxu1 }
 0x1ed   :  { %848 = vtanh.f32 %v251_v40  ;;  %v740_v43 = vpop.f32.mrb[3].mxu1 }
 0x1f7   :  { %v849_v44 = vpop.eup %848 }
 0x1f8   :  { %v257_v45 = vpack.c.bf16 %v849_v44, %v849_v44 }
 0x1fa   :  { %758 = vmatmul.mubr.bf16.vlgmr.msra.gmra.mrb[4].mxu0 %v257_v45 }
 0x1fb   :  { %797 = vmatprep.mubr.msk.bf16.mxu0 %vm882_vm0, %v881_v0  ;;  %782 = vmatpush3.bf16.msra.mxu0 %v838_v50 }
 0x1fc   :  { %783 = vmatprep.subr.bf16.mxu0 %v881_v0 }
 0x1ff   :  { %784 = vmatpush3.bf16.msra.mxu0 %v839_v51 }
 0x200   :  { %785 = vmatprep.subr.bf16.mxu0 %v881_v0 }
 0x203   :  { %786 = vmatpush3.bf16.msra.mxu0 %v840_v52 }
 0x204   :  { %787 = vmatprep.subr.bf16.mxu0 %v881_v0 }
 0x207   :  { %788 = vmatpush3.bf16.msra.mxu0 %v841_v53 }
 0x208   :  { %789 = vmatprep.subr.bf16.mxu0 %v881_v0 }
 0x20b   :  { %790 = vmatpush3.bf16.msra.mxu0 %v842_v62 }
 0x20c   :  { %791 = vmatprep.subr.bf16.mxu0 %v881_v0 }
 0x20f   :  { %792 = vmatpush3.bf16.msra.mxu0 %v843_v63 }
 0x210   :  { %793 = vmatprep.subr.bf16.mxu0 %v881_v0 }
 0x213   :  { %794 = vmatpush3.bf16.msra.mxu0 %v844_v1 }
 0x214   :  { %795 = vmatprep.subr.bf16.mxu0 %v881_v0 }
 0x217   :  { %796 = vmatpush3.bf16.msra.mxu0 %v845_v2 }
 0x2cd   :  { %v365_v55 = vpop.f32.mrb[4].mxu0 }
 0x2ce   :  { %v366_v56 = vadd.f32 %v627_v54, %v365_v55  ;;  %v759_v57 = vpop.f32.mrb[5].mxu0 }
 0x2cf   :  { %v368_v58 = vpop.f32.mrb[6].mxu0 }
 0x2d0   :  { %850 = vtanh.f32 %v366_v56  ;;  %v760_v59 = vpop.f32.mrb[7].mxu0 }
 0x2da   :  { %v851_v60 = vpop.eup %850 }
 0x2db   :  { %v372_v61 = vpack.c.bf16 %v851_v60, %v851_v60 }
 0x2dd   :  { %778 = vmatmul.mubr.bf16.vlgmr.msra.gmra.mrb[4].mxu1 %v372_v61 }
 0x3b0   :  { %v480_v4 = vpop.f32.mrb[4].mxu1 }
 0x3b1   :  { %v481_v5 = vadd.f32 %v637_v3, %v480_v4  ;;  %v779_v6 = vpop.f32.mrb[5].mxu1 }
 0x3b2   :  { %v483_v7 = vpop.f32.mrb[6].mxu1 }
 0x3b3   :  { %852 = vtanh.f32 %v481_v5  ;;  %v780_v8 = vpop.f32.mrb[7].mxu1 }
 0x3bd   :  { %v853_v9 = vpop.eup %852 }
 0x3be   :  { %v487_v10 = vpack.c.bf16 %v853_v9, %v853_v9 }
 0x3c0   :  { %798 = vmatmul.mubr.bf16.vlgmr.msra.gmra.mrb[8].mxu0 %v487_v10 }
 0x493   :  { %v595_v0 = vpop.f32.mrb[8].mxu0 }
 0x494   :  { %v596_v12 = vadd.f32 %v647_v11, %v595_v0  ;;  %v799_v13 = vpop.f32.mrb[9].mxu0 }
 0x495   :  { %v598_v14 = vpop.f32.mrb[10].mxu0 }
 0x496   :  { %601 = vst [vmem:[%s989_s3] sm:$0xff] %v596_v12  ;;  %v800_v15 = vpop.f32.mrb[11].mxu0 }
 0x497   :  { %606 = vsyncpa [#allocation3], 1 }

</bundles_post_ra>
